<compile_context>
chip_gen: v7x
topology: tpu7x:2x2x1
jax: 0.10.0
libtpu: 0.0.40
codegen_flags: <defaults>
</compile_context>

<pallas_src>
import functools

import jax
import jax.numpy as jnp
from jax import lax
from jax.experimental import pallas as pl
from jax.experimental.pallas import tpu as pltpu


def _as_i32(v):
    """Reinterpret a Python uint32 constant as a signed int32 value."""
    v &= 0xFFFFFFFF
    return v - (1 << 32) if v >= (1 << 31) else v


def _hash_keep(shape, b, qi, ki, q_total, k_total, seed_add, thresh_signed):
    """Counter-based hash -> boolean keep mask (True = keep). All int32 math
    (wraparound == uint32 bit pattern); logical shifts via lax; the unsigned
    threshold compare is done with the sign-bit-flip trick."""
    tq, tk = shape
    ri = lax.broadcasted_iota(jnp.int32, shape, 0) + qi * tq   # global row
    ci = lax.broadcasted_iota(jnp.int32, shape, 1) + ki * tk   # global col
    x = (b * q_total + ri) * k_total + ci + jnp.int32(seed_add)
    # lowbias32-style mixer
    x = x ^ lax.shift_right_logical(x, 16)
    x = x * jnp.int32(_as_i32(0x7FEB352D))
    x = x ^ lax.shift_right_logical(x, 15)
    x = x * jnp.int32(_as_i32(0x846CA68B))
    x = x ^ lax.shift_right_logical(x, 16)
    # (bits as u32) >= threshold  <=>  (bits ^ 0x80000000) >=signed (threshold - 2^31)
    return (x ^ jnp.int32(-(1 << 31))) >= jnp.int32(thresh_signed)


def _sdp_flash_kernel(q_ref, k_ref, v_ref, m_ref, o_ref,
                      m_sc, l_sc, acc_sc, *,
                      scale, p_drop, inv_keep, thresh_signed, seed_add,
                      q_total, k_total):
    ki = pl.program_id(2)

    @pl.when(ki == 0)
    def _():
        m_sc[...] = jnp.full(m_sc.shape, -jnp.inf, dtype=jnp.float32)
        l_sc[...] = jnp.zeros(l_sc.shape, dtype=jnp.float32)
        acc_sc[...] = jnp.zeros(acc_sc.shape, dtype=jnp.float32)

    q = q_ref[0]        # (tq, dk) f32
    k = k_ref[0]        # (tk, dk) f32
    v = v_ref[0]        # (tk, dv) f32
    mask = m_ref[0]     # (1, tk)  f32; 0 == masked

    # Fold 1/sqrt(dk) into q; bf16 MXU operands, f32 accumulation.
    qs = (q * jnp.float32(scale)).astype(jnp.bfloat16)
    ks = k.astype(jnp.bfloat16)
    # scores: contract the dk dims directly (no k.T materialization).
    s = lax.dot_general(qs, ks, (((1,), (1,)), ((), ())),
                        preferred_element_type=jnp.float32)          # (tq, tk)
    s = s + jnp.where(mask == 0.0, jnp.float32(-1e10), jnp.float32(0.0))

    # Online softmax update.
    m_prev = m_sc[...]
    m_new = jnp.maximum(m_prev, jnp.max(s, axis=-1, keepdims=True))
    alpha = jnp.exp(m_prev - m_new)
    p = jnp.exp(s - m_new)
    l_sc[...] = alpha * l_sc[...] + jnp.sum(p, axis=-1, keepdims=True)
    m_sc[...] = m_new

    # Dropout on the probabilities feeding PV (denominator unaffected).
    if p_drop > 0.0:
        keep = _hash_keep(s.shape, pl.program_id(0), pl.program_id(1), ki,
                          q_total, k_total, seed_add, thresh_signed)
        p = jnp.where(keep, p * jnp.float32(inv_keep), jnp.float32(0.0))

    acc_sc[...] = alpha * acc_sc[...] + jnp.dot(
        p.astype(jnp.bfloat16), v.astype(jnp.bfloat16),
        preferred_element_type=jnp.float32)

    @pl.when(ki == pl.num_programs(2) - 1)
    def _():
        o_ref[0] = (acc_sc[...] *
                    pl.reciprocal(l_sc[...], approx=True)).astype(o_ref.dtype)


def _pick_tile(dim, candidates):
    for c in candidates:
        if dim >= c and dim % c == 0:
            return c
    return dim   # fall back to the full (untiled) axis


def scaled_dot_product(query, key, value, attn_mask, dropout=0.1, seed=0):
    bs_h, K, dk = key.shape
    _, Q, _ = query.shape
    dv = value.shape[-1]
    bs, K_m = attn_mask.shape
    assert K_m == K
    h = bs_h // bs
    assert bs_h == h * bs, "bs_h must be a multiple of attn_mask batch size"

    # Q tiles: divisible by 8 (or full Q). K tiles also feed the mask block's
    # last dim, so keep them multiples of 128 (or full K).
    tq = _pick_tile(Q, (256, 128, 64, 32, 16, 8))
    tk = _pick_tile(K, (512, 256, 128))

    mask3 = attn_mask.astype(jnp.float32).reshape(bs, 1, K)   # no h-fold tiling

    p_drop = float(dropout)
    kernel = functools.partial(
        _sdp_flash_kernel,
        scale=float(1.0 / (dk ** 0.5)),
        p_drop=p_drop,
        inv_keep=float(1.0 / (1.0 - p_drop)) if p_drop < 1.0 else 0.0,
        thresh_signed=min(int(round(p_drop * 4294967296.0)), 4294967295) - (1 << 31),
        seed_add=_as_i32(int(seed) * 0x9E3779B9),
        q_total=int(Q),
        k_total=int(K),
    )

    grid = (bs_h, Q // tq, K // tk)
    out = pl.pallas_call(
        kernel,
        out_shape=jax.ShapeDtypeStruct((bs_h, Q, dv), jnp.float32),
        grid_spec=pltpu.PrefetchScalarGridSpec(
            num_scalar_prefetch=0,
            grid=grid,
            in_specs=[
                pl.BlockSpec((1, tq, dk), lambda b, qi, ki: (b, qi, 0)),     # query
                pl.BlockSpec((1, tk, dk), lambda b, qi, ki: (b, ki, 0)),     # key
                pl.BlockSpec((1, tk, dv), lambda b, qi, ki: (b, ki, 0)),     # value
                pl.BlockSpec((1, 1, tk), lambda b, qi, ki: (b % bs, 0, ki)), # mask
            ],
            out_specs=pl.BlockSpec((1, tq, dv), lambda b, qi, ki: (b, qi, 0)),
            scratch_shapes=[
                pltpu.VMEM((tq, 1), jnp.float32),    # running max  m
                pltpu.VMEM((tq, 1), jnp.float32),    # running sum  l
                pltpu.VMEM((tq, dv), jnp.float32),   # output accumulator
            ],
        ),
        compiler_params=pltpu.CompilerParams(
            dimension_semantics=("parallel", "parallel", "arbitrary"),
            # Tiles above stay well under 32 MiB even double-buffered; explicit
            # limit is safe on v5e (16 MiB default) and v7x (64 MiB physical).
            vmem_limit_bytes=32 * 1024 * 1024,
        ),
    )(query, key, value, mask3)
    return out


def _reference_no_dropout(query, key, value, attn_mask):
    """Pure-JAX reference of the module forward with dropout disabled."""
    bs_h, K, dk = key.shape
    bs = attn_mask.shape[0]
    h = bs_h // bs
    s = jnp.einsum('bqd,bkd->bqk', query, key) / (dk ** 0.5)
    m = jnp.tile(attn_mask, (h, 1))[:, None, :]
    s = s + jnp.where(m == 0, -1e10, 0.0)
    p = jax.nn.softmax(s, axis=-1)
    return jnp.einsum('bqk,bkd->bqd', p, value)


if __name__ == "__main__":
    # Small shapes: bs=2 sequences, h=2 heads -> bs_h=4; Q=K=8, dk=dv=32.
    bs, h, Q, K, dk, dv = 2, 2, 8, 8, 32, 32
    bs_h = bs * h

    root = jax.random.PRNGKey(0)
    kq, kk, kv, km = jax.random.split(root, 4)

    query = jax.random.normal(kq, (bs_h, Q, dk), dtype=jnp.float32)
    key = jax.random.normal(kk, (bs_h, K, dk), dtype=jnp.float32)
    value = jax.random.normal(kv, (bs_h, K, dv), dtype=jnp.float32)
    # attn_mask: 0 marks masked-out key positions (mask.eq(0) -> -1e10 bias).
    attn_mask = (jax.random.uniform(km, (bs, K)) > 0.3).astype(jnp.float32)
    attn_mask = attn_mask.at[:, 0].set(1.0)   # at least one valid key per row

    # Correctness check against the pure-JAX reference with dropout disabled
    # (loose tolerance: bf16 MXU operands with f32 accumulation).
    out0 = jax.block_until_ready(
        scaled_dot_product(query, key, value, attn_mask, dropout=0.0))
    ref0 = _reference_no_dropout(query, key, value, attn_mask)
    assert out0.shape == (bs_h, Q, dv)
    assert bool(jnp.all(jnp.abs(out0 - ref0) < 0.1))

    # Forward as specified by the module (dropout=0.1, training semantics).
    out = jax.block_until_ready(
        scaled_dot_product(query, key, value, attn_mask, dropout=0.1, seed=0))
    assert out.shape == (bs_h, Q, dv)
    assert bool(jnp.all(jnp.isfinite(out)))
    print("KERNEL_OK")
</pallas_src>

<mosaic_0001>
module attributes {stable_mosaic.version = 11 : i64} {
  func.func @_sdp_flash_kernel(%arg0: i32, %arg1: i32, %arg2: i32, %arg3: memref<1x8x32xf32, #tpu.memory_space<vmem>>, %arg4: memref<1x8x32xf32, #tpu.memory_space<vmem>>, %arg5: memref<1x8x32xf32, #tpu.memory_space<vmem>>, %arg6: memref<1x1x8xf32, #tpu.memory_space<vmem>>, %arg7: memref<1x8x32xf32, #tpu.memory_space<vmem>>, %arg8: memref<8x1xf32, #tpu.memory_space<vmem>>, %arg9: memref<8x1xf32, #tpu.memory_space<vmem>>, %arg10: memref<8x32xf32, #tpu.memory_space<vmem>>) attributes {dimension_semantics = [#tpu.dimension_semantics<parallel>, #tpu.dimension_semantics<parallel>, #tpu.dimension_semantics<arbitrary>], iteration_bounds = array<i64: 4, 1, 1>, scalar_prefetch = 0 : i64, scratch_operands = 3 : i64, tpu.core_type = #tpu.core_type<tc>, window_params = [{transform_indices = @transform_0, window_bounds = array<i64: 1, 8, 32>}, {transform_indices = @transform_1, window_bounds = array<i64: 1, 8, 32>}, {transform_indices = @transform_2, window_bounds = array<i64: 1, 8, 32>}, {transform_indices = @transform_3, window_bounds = array<i64: 1, 1, 8>}, {transform_indices = @transform_4, window_bounds = array<i64: 1, 8, 32>}]} {
    %c0_i32 = arith.constant 0 : i32
    %0 = arith.cmpi eq, %arg2, %c0_i32 : i32
    %1 = arith.extui %0 : i1 to i32
    %c0_i32_0 = arith.constant 0 : i32
    %2 = arith.cmpi ne, %1, %c0_i32_0 : i32
    scf.if %2 {
      %cst_33 = arith.constant 0xFF800000 : f32
      %50 = vector.broadcast %cst_33 : f32 to vector<8x1xf32>
      %c0_34 = arith.constant 0 : index
      %c0_35 = arith.constant 0 : index
      %51 = vector.load %arg8[%c0_34, %c0_35] : memref<8x1xf32, #tpu.memory_space<vmem>>, vector<8x1xf32>
      tpu.vector_store %arg8[%c0_34, %c0_35], %50 {strides = array<i32>} : memref<8x1xf32, #tpu.memory_space<vmem>>, vector<8x1xf32>,
      %cst_36 = arith.constant 0.000000e+00 : f32
      %52 = vector.broadcast %cst_36 : f32 to vector<8x1xf32>
      %c0_37 = arith.constant 0 : index
      %c0_38 = arith.constant 0 : index
      %53 = vector.load %arg9[%c0_37, %c0_38] : memref<8x1xf32, #tpu.memory_space<vmem>>, vector<8x1xf32>
      tpu.vector_store %arg9[%c0_37, %c0_38], %52 {strides = array<i32>} : memref<8x1xf32, #tpu.memory_space<vmem>>, vector<8x1xf32>,
      %cst_39 = arith.constant 0.000000e+00 : f32
      %54 = vector.broadcast %cst_39 : f32 to vector<8x32xf32>
      %c0_40 = arith.constant 0 : index
      %c0_41 = arith.constant 0 : index
      %55 = vector.load %arg10[%c0_40, %c0_41] : memref<8x32xf32, #tpu.memory_space<vmem>>, vector<8x32xf32>
      tpu.vector_store %arg10[%c0_40, %c0_41], %54 {strides = array<i32>} : memref<8x32xf32, #tpu.memory_space<vmem>>, vector<8x32xf32>,
    } else {
    }
    %c0 = arith.constant 0 : index
    %c0_1 = arith.constant 0 : index
    %c0_2 = arith.constant 0 : index
    %3 = vector.load %arg3[%c0, %c0_1, %c0_2] : memref<1x8x32xf32, #tpu.memory_space<vmem>>, vector<1x8x32xf32>
    %4 = vector.shape_cast %3 : vector<1x8x32xf32> to vector<8x32xf32>
    %c0_3 = arith.constant 0 : index
    %c0_4 = arith.constant 0 : index
    %c0_5 = arith.constant 0 : index
    %5 = vector.load %arg4[%c0_3, %c0_4, %c0_5] : memref<1x8x32xf32, #tpu.memory_space<vmem>>, vector<1x8x32xf32>
    %6 = vector.shape_cast %5 : vector<1x8x32xf32> to vector<8x32xf32>
    %c0_6 = arith.constant 0 : index
    %c0_7 = arith.constant 0 : index
    %c0_8 = arith.constant 0 : index
    %7 = vector.load %arg5[%c0_6, %c0_7, %c0_8] : memref<1x8x32xf32, #tpu.memory_space<vmem>>, vector<1x8x32xf32>
    %8 = vector.shape_cast %7 : vector<1x8x32xf32> to vector<8x32xf32>
    %c0_9 = arith.constant 0 : index
    %c0_10 = arith.constant 0 : index
    %c0_11 = arith.constant 0 : index
    %9 = vector.load %arg6[%c0_9, %c0_10, %c0_11] : memref<1x1x8xf32, #tpu.memory_space<vmem>>, vector<1x1x8xf32>
    %10 = vector.shape_cast %9 : vector<1x1x8xf32> to vector<1x8xf32>
    %cst = arith.constant 0.176776692 : f32
    %11 = vector.broadcast %cst : f32 to vector<8x32xf32>
    %12 = arith.mulf %4, %11 : vector<8x32xf32>
    %13 = arith.truncf %12 : vector<8x32xf32> to vector<8x32xbf16>
    %14 = arith.truncf %6 : vector<8x32xf32> to vector<8x32xbf16>
    %cst_12 = arith.constant dense<0.000000e+00> : vector<8x8xf32>
    %15 = tpu.matmul %13, %14, %cst_12 {dimension_numbers = #tpu.dot_dimension_numbers<[1], [1], [0], [0], [0, 0, 1, 0], [], []>} : vector<8x32xbf16>, vector<8x32xbf16>, vector<8x8xf32> -> vector<8x8xf32>
    %cst_13 = arith.constant 0.000000e+00 : f32
    %16 = vector.broadcast %cst_13 : f32 to vector<1x8xf32>
    %17 = arith.cmpf oeq, %10, %16 : vector<1x8xf32>
    %cst_14 = arith.constant -1.000000e+10 : f32
    %cst_15 = arith.constant 0.000000e+00 : f32
    %18 = vector.broadcast %cst_14 : f32 to vector<1x8xf32>
    %19 = vector.broadcast %cst_15 : f32 to vector<1x8xf32>
    %20 = arith.select %17, %18, %19 : vector<1x8xi1>, vector<1x8xf32>
    %21 = vector.broadcast %20 : vector<1x8xf32> to vector<8x8xf32>
    %22 = arith.addf %15, %21 : vector<8x8xf32>
    %c0_16 = arith.constant 0 : index
    %c0_17 = arith.constant 0 : index
    %23 = vector.load %arg8[%c0_16, %c0_17] : memref<8x1xf32, #tpu.memory_space<vmem>>, vector<8x1xf32>
    %cst_18 = arith.constant dense<0xFF800000> : vector<8xf32>
    %24 = vector.multi_reduction <maximumf>, %22, %cst_18 [1] : vector<8x8xf32> to vector<8xf32>
    %25 = vector.shape_cast %24 : vector<8xf32> to vector<8x1xf32>
    %26 = arith.maximumf %23, %25 : vector<8x1xf32>
    %27 = arith.subf %23, %26 : vector<8x1xf32>
    %28 = math.exp %27 : vector<8x1xf32>
    %29 = vector.broadcast %26 : vector<8x1xf32> to vector<8x8xf32>
    %30 = arith.subf %22, %29 : vector<8x8xf32>
    %31 = math.exp %30 : vector<8x8xf32>
    %c0_19 = arith.constant 0 : index
    %c0_20 = arith.constant 0 : index
    %32 = vector.load %arg9[%c0_19, %c0_20] : memref<8x1xf32, #tpu.memory_space<vmem>>, vector<8x1xf32>
    %33 = arith.mulf %28, %32 : vector<8x1xf32>
    %cst_21 = arith.constant dense<0.000000e+00> : vector<8xf32>
    %34 = vector.multi_reduction <add>, %31, %cst_21 [1] : vector<8x8xf32> to vector<8xf32>
    %35 = vector.shape_cast %34 : vector<8xf32> to vector<8x1xf32>
    %36 = arith.addf %33, %35 : vector<8x1xf32>
    %c0_22 = arith.constant 0 : index
    %c0_23 = arith.constant 0 : index
    %37 = vector.load %arg9[%c0_22, %c0_23] : memref<8x1xf32, #tpu.memory_space<vmem>>, vector<8x1xf32>
    tpu.vector_store %arg9[%c0_22, %c0_23], %36 {strides = array<i32>} : memref<8x1xf32, #tpu.memory_space<vmem>>, vector<8x1xf32>,
    %c0_24 = arith.constant 0 : index
    %c0_25 = arith.constant 0 : index
    %38 = vector.load %arg8[%c0_24, %c0_25] : memref<8x1xf32, #tpu.memory_space<vmem>>, vector<8x1xf32>
    tpu.vector_store %arg8[%c0_24, %c0_25], %26 {strides = array<i32>} : memref<8x1xf32, #tpu.memory_space<vmem>>, vector<8x1xf32>,
    %c0_26 = arith.constant 0 : index
    %c0_27 = arith.constant 0 : index
    %39 = vector.load %arg10[%c0_26, %c0_27] : memref<8x32xf32, #tpu.memory_space<vmem>>, vector<8x32xf32>
    %40 = vector.broadcast %28 : vector<8x1xf32> to vector<8x32xf32>
    %41 = arith.mulf %40, %39 : vector<8x32xf32>
    %42 = arith.truncf %31 : vector<8x8xf32> to vector<8x8xbf16>
    %43 = arith.truncf %8 : vector<8x32xf32> to vector<8x32xbf16>
    %cst_28 = arith.constant dense<0.000000e+00> : vector<8x32xf32>
    %44 = tpu.matmul %42, %43, %cst_28 {dimension_numbers = #tpu.dot_dimension_numbers<[1], [0], [0], [1], [0, 0, 1, 1], [], []>} : vector<8x8xbf16>, vector<8x32xbf16>, vector<8x32xf32> -> vector<8x32xf32>
    %45 = arith.addf %41, %44 : vector<8x32xf32>
    %c0_29 = arith.constant 0 : index
    %c0_30 = arith.constant 0 : index
    %46 = vector.load %arg10[%c0_29, %c0_30] : memref<8x32xf32, #tpu.memory_space<vmem>>, vector<8x32xf32>
    tpu.vector_store %arg10[%c0_29, %c0_30], %45 {strides = array<i32>} : memref<8x32xf32, #tpu.memory_space<vmem>>, vector<8x32xf32>,
    %c0_i32_31 = arith.constant 0 : i32
    %47 = arith.cmpi eq, %arg2, %c0_i32_31 : i32
    %48 = arith.extui %47 : i1 to i32
    %c0_i32_32 = arith.constant 0 : i32
    %49 = arith.cmpi ne, %48, %c0_i32_32 : i32
    scf.if %49 {
      %c0_33 = arith.constant 0 : index
      %c0_34 = arith.constant 0 : index
      %50 = vector.load %arg10[%c0_33, %c0_34] : memref<8x32xf32, #tpu.memory_space<vmem>>, vector<8x32xf32>
      %c0_35 = arith.constant 0 : index
      %c0_36 = arith.constant 0 : index
      %51 = vector.load %arg9[%c0_35, %c0_36] : memref<8x1xf32, #tpu.memory_space<vmem>>, vector<8x1xf32>
      %52 = tpu.reciprocal %51 {approx = true} : vector<8x1xf32> -> vector<8x1xf32>
      %53 = vector.broadcast %52 : vector<8x1xf32> to vector<8x32xf32>
      %54 = arith.mulf %50, %53 : vector<8x32xf32>
      %c0_37 = arith.constant 0 : index
      %c0_38 = arith.constant 0 : index
      %c0_39 = arith.constant 0 : index
      %55 = vector.load %arg7[%c0_37, %c0_38, %c0_39] : memref<1x8x32xf32, #tpu.memory_space<vmem>>, vector<1x8x32xf32>
      %56 = vector.shape_cast %55 : vector<1x8x32xf32> to vector<8x32xf32>
      %57 = vector.shape_cast %54 : vector<8x32xf32> to vector<1x8x32xf32>
      tpu.vector_store %arg7[%c0_37, %c0_38, %c0_39], %57 {strides = array<i32>} : memref<1x8x32xf32, #tpu.memory_space<vmem>>, vector<1x8x32xf32>,
    } else {
    }
    return
  }
  func.func @transform_0(%arg0: i32, %arg1: i32, %arg2: i32) -> (i32, i32, i32) {
    %c0_i32 = arith.constant 0 : i32
    %c0_i32_0 = arith.constant 0 : i32
    return %arg0, %arg1, %c0_i32 : i32, i32, i32
  }
  func.func @transform_1(%arg0: i32, %arg1: i32, %arg2: i32) -> (i32, i32, i32) {
    %c0_i32 = arith.constant 0 : i32
    %c0_i32_0 = arith.constant 0 : i32
    return %arg0, %arg2, %c0_i32 : i32, i32, i32
  }
  func.func @transform_2(%arg0: i32, %arg1: i32, %arg2: i32) -> (i32, i32, i32) {
    %c0_i32 = arith.constant 0 : i32
    %c0_i32_0 = arith.constant 0 : i32
    return %arg0, %arg2, %c0_i32 : i32, i32, i32
  }
  func.func @transform_3(%arg0: i32, %arg1: i32, %arg2: i32) -> (i32, i32, i32) {
    %c2_i32 = arith.constant 2 : i32
    %c0_i32 = arith.constant 0 : i32
    %0 = arith.cmpi eq, %c2_i32, %c0_i32 : i32
    %c1_i32 = arith.constant 1 : i32
    %1 = arith.select %0, %c1_i32, %c2_i32 : i32
    %2 = arith.remsi %arg0, %1 : i32
    %c0_i32_0 = arith.constant 0 : i32
    %3 = arith.cmpi ne, %2, %c0_i32_0 : i32
    %c0_i32_1 = arith.constant 0 : i32
    %4 = arith.cmpi slt, %2, %c0_i32_1 : i32
    %c0_i32_2 = arith.constant 0 : i32
    %5 = arith.cmpi slt, %1, %c0_i32_2 : i32
    %6 = arith.xori %4, %5 : i1
    %7 = arith.andi %6, %3 : i1
    %8 = arith.addi %2, %1 : i32
    %9 = arith.select %7, %8, %2 : i32
    %c0_i32_3 = arith.constant 0 : i32
    %c0_i32_4 = arith.constant 0 : i32
    return %9, %c0_i32_3, %arg2 : i32, i32, i32
  }
  func.func @transform_4(%arg0: i32, %arg1: i32, %arg2: i32) -> (i32, i32, i32) {
    %c0_i32 = arith.constant 0 : i32
    %c0_i32_0 = arith.constant 0 : i32
    return %arg0, %arg1, %c0_i32 : i32, i32, i32
  }
}

</mosaic_0001>

<bundles_post_ra>
// kernel: tpu_custom_call.1
= control target key start
LH: loop header
LB: loop body
LE: loop exit
PB: predicated region body
PF: predicated region fallthrough
CT: control target
= control target key end

     0   :  { %s1368_s0 = inlined_call_operand.hbm [shape: f32[4,8,32], index: 0, kind: input, shape index: {}]   ;;  %s1369_s1 = inlined_call_operand.hbm [shape: f32[4,8,32], index: 1, kind: input, shape index: {}]   ;;  %s1370_s2 = inlined_call_operand.hbm [shape: f32[4,8,32], index: 2, kind: input, shape index: {}]   ;;  %s1371_s3 = inlined_call_operand.vmem [shape: f32[2,1,8], index: 3, kind: input, shape index: {}]   ;;  %s1372_s4 = inlined_call_operand.hbm [shape: f32[4,8,32], index: 4, kind: output, shape index: {}]  }
   0x1   :  { %1380 = sst [smem:[#allocation19_spill]] %s1369_s1 }
   0x2   :  { %9 = vsyncpa [#allocation6], 0 }
   0x3   :  { %11 = vsyncpa [#allocation6 + $0x1], 0 }
   0x4   :  { %12 = vsyncpa [#allocation9], 0 }
   0x5   :  { %14 = vsyncpa [#allocation9 + $0x1], 0 }
   0x6   :  { %15 = vsyncpa [#allocation7], 0 }
   0x7   :  { %17 = vsyncpa [#allocation7 + $0x1], 0  ;;  %s1088_s15 = smov 0   ;;  %s1090_s16 = smov 0  }
   0x8   :  { %s1092_s17 = smov 0   ;;  %s1094_s18 = smov 0  }
   0x9   :  { %s1096_s19 = smov 0   ;;  %s1098_s20 = smov 0  }
   0xa LB: > { %1381 = sst [smem:[#allocation15_spill]] %s1049_s19  ;;  %s1119_s21 = sadd.s32 4294967295, %s1053_s20   ;;  %s1053_s20 = sphi %s1098_s20, %s23_s20   ;;  %s1049_s19 = sphi %s1096_s19, %s1404_s19   ;;  %s1045_s18 = sphi %s1094_s18, %s1403_s18   ;;  %s1041_s17 = sphi %s1092_s17, %s1407_s17   ;;  %s1037_s16 = sphi %s1090_s16, %s1406_s16   ;;  %s1033_s15 = sphi %s1088_s15, %s1405_s15  }
   0xb   : > { %s748_s22 = sadd.s32 4294967294, %s1053_s20   ;;  %s42_s23 = sadd.s32 1, %s1049_s19 }
   0xc   : > { %s51_s24 = sadd.s32 1, %s1041_s17  ;;  %p44_p0 = scmp.ge.s32.totalorder %s42_s23, 4 }
   0xd   : > { %p58_p1 = scmp.ne.s32.totalorder %s1041_s17, %s1037_s16  ;;  %p59_p2 = scmp.eq.s32.totalorder %s1053_s20, 0 }
   0xe   : > { %p64_p3 = scmp.ne.s32.totalorder %s1037_s16, %s1033_s15  ;;  %s1409_s23 = smov (%p44_p0, %s42_s23), 0 }
   0xf   : > { %1382 = sst [smem:[#allocation16_spill]] %s1409_s23  ;;  %p1131_p4 = por %p59_p2, %p58_p1 }
  0x10   : > { %p65_p5 = scmp.eq.s32.totalorder %s1119_s21, 0  ;;  %s46_s26 = ssub.s32 %s1049_s19, %s1409_s23 }
  0x11   : > { %p198_p6 = scmp.eq.s32.totalorder %s1119_s21, 3  ;;  %p49_p7 = scmp.eq.s32.totalorder %s46_s26, 0 }
  0x12   : > { %p1139_p8 = por %p65_p5, %p64_p3  ;;  %p204_p10 = scmp.eq.s32.totalorder %s748_s22, 3 }
  0x13   : > { %p1143_p9 = por %p198_p6, %p58_p1  ;;  %p815_p12 = scmp.lt.s32.totalorder %s1053_s20, 4 }
  0x14   : > { %s1384_s27 = scalar_select %p1139_p8, 1, 0 }
  0x15   : > { %s1385_s28 = scalar_select %p1143_p9, 1, 0 }
  0x16   : > { %s1148_s29 = scalar_select %p49_p7, %s1041_s17, %s51_s24  }
  0x17   : > { %p1150_p11 = por %p204_p10, %p64_p3  ;;  %s1373_s5 = sand.u32 1, %s1041_s17  }
  0x18   : > { %1386 = sst [smem:[#allocation17_spill]] %s1148_s29  ;;  %s1158_s6 = sshll.u32 %s1373_s5, 3 }
  0x19   : > { %s1387_s30 = scalar_select %p1150_p11, 1, 0 }
  0x1a   : > { %s1161_s7 = sshll.u32 %s1049_s19, 7  ;;  %p1165_p13 = pnand %p815_p12, %p1131_p4 }
  0x1b   : > { %1388 = sst [smem:[#allocation18_spill]] %s1387_s30  ;;  %s243_s9 = sand.u32 1, %s1053_s20  }
  0x1c   : > { %s1389_s8 = scalar_select %p1165_p13, 1, 0 }
  0x1d   : > { %s1390_s1 = sld [smem:[#allocation19_spill]]  ;;  %s247_s13 = scalar_lea.vmem [#allocation8], %s1158_s6 }
  0x1e   : > { %s255_s14 = sshll.u32 %s247_s13, 4  ;;  %s1181_s22 = scalar_lea.sflag [#allocation9], %s243_s9  ;;  %s1178_s14 = int_to_ptr.vmem [resolvable:$true] %s255_s14 }
  0x1f   : > { %p1187_p3 = pneg %p1165_p13 }
  0x23   : > { %s1174_s12 = scalar_lea.hbm %s1390_s1, %s1161_s7  ;;  %s882_s11 = scalar_lea.hbm %s1390_s1, 512 }
  0x24   : > { %s877_s24 = scalar_lea.hbm %s1174_s12, 128  ;;  %p883_p6 = scmp.lt.u32.totalorder %s1174_s12, %s1390_s1 }
  0x25   : > { %p878_p2 = scmp.ne.s32.totalorder %s1174_s12, %s877_s24  ;;  %p884_p7 = scmp.lt.u32.totalorder %s882_s11, %s877_s24 }
  0x26   : > { %p886_p12 = scmp.lt.u32.totalorder %s877_s24, %s1174_s12 }
  0x27   : > { %p880_p4 = pnand %p1187_p3, %p878_p2  ;;  %p885_p10 = por %p884_p7, %p883_p6 }
  0x29   : > { %p881_p5 = pneg %p880_p4  ;;  %p887_p0 = por %p886_p12, %p885_p10 }
  0x2b   : > { %p888_p1 = pnand %p887_p0, %p881_p5 }
  0x2d   : > { %891 = shalt.err (!%p888_p1)
}
  0x2e   : > { %s892_s9 = scalar_lea.vmem %s1178_s14, 128  ;;  %s1055_s26 = smov [#allocation8]  }
  0x2f   : > { %p893_p2 = scmp.ne.s32.totalorder %s1178_s14, %s892_s9  ;;  %s897_s10 = sshll.u32 %s1055_s26, 4  ;;  %s898_s10 = int_to_ptr.vmem [resolvable:$false] %s897_s10 }
  0x30   : > { %s899_s5 = scalar_lea.vmem %s898_s10, 256  ;;  %p900_p9 = scmp.lt.s32.totalorder %s1178_s14, %s898_s10 }
  0x31   : > { %p895_p4 = pnand %p893_p2, %p1187_p3  ;;  %p901_p8 = scmp.lt.s32.totalorder %s899_s5, %s892_s9 }
  0x33   : > { %p896_p11 = pneg %p895_p4  ;;  %p902_p6 = por %p901_p8, %p900_p9 }
  0x35   : > { %p903_p7 = pnand %p902_p6, %p896_p11 }
  0x37   : > { %906 = shalt.err (!%p903_p7)
}
  0x38   : > { %807 = dma.hbm_to_vmem [thread:$0]  (!%p1165_p13), %s1174_s12, 128, %s1178_s14, %s1181_s22  }
  0x39   : > { %p1392_p0 = scmp.lt.s32.totalorder %s1053_s20, 5  ;;  %p1393_p1 = scmp.ge.s32.totalorder %s1053_s20, 1 }
  0x3a   : > { %s1223_s9 = scalar_lea.hbm %s1368_s0, %s1161_s7  ;;  %s228_s26 = scalar_lea.vmem [#allocation5], %s1158_s6 }
  0x3b   : > { %p1215_p5 = pnand %p1393_p1, %p1392_p0  ;;  %s236_s10 = sshll.u32 %s228_s26, 4  ;;  %s1226_s10 = int_to_ptr.vmem [resolvable:$true] %s236_s10 }
  0x3c   : > { %s1232_s5 = scalar_lea.hbm %s1370_s2, %s1161_s7  ;;  %s1395_s1 = sand.u32 1, %s1041_s17  }
  0x3d   : > { %s1394_s24 = scalar_select %p1215_p5, 1, 0 }
  0x3e   : > { %s225_s23 = scalar_lea.sflag [#allocation6], %s1395_s1  ;;  %s907_s19 = scalar_lea.hbm %s1223_s9, 128 }
  0x3f   : > { %p908_p8 = scmp.ne.s32.totalorder %s1223_s9, %s907_s19  ;;  %s912_s29 = scalar_lea.hbm %s1368_s0, 512 }
  0x40   : > { %p913_p10 = scmp.lt.u32.totalorder %s1223_s9, %s1368_s0  ;;  %p914_p12 = scmp.lt.u32.totalorder %s912_s29, %s907_s19 }
  0x41   : > { %p910_p9 = pnand %p908_p8, %p1187_p3  ;;  %p916_p4 = scmp.lt.u32.totalorder %s907_s19, %s1223_s9 }
  0x42   : > { %p915_p2 = por %p914_p12, %p913_p10 }
  0x43   : > { %p911_p11 = pneg %p910_p9 }
  0x44   : > { %p917_p6 = por %p916_p4, %p915_p2 }
  0x46   : > { %p918_p7 = pnand %p917_p6, %p911_p11 }
  0x48   : > { %921 = shalt.err (!%p918_p7)
}
  0x49   : > { %s922_s1 = scalar_lea.vmem %s1226_s10, 128  ;;  %s1056_s7 = smov [#allocation5]  }
  0x4a   : > { %p923_p0 = scmp.ne.s32.totalorder %s1226_s10, %s922_s1  ;;  %s927_s12 = sshll.u32 %s1056_s7, 4  ;;  %s928_s12 = int_to_ptr.vmem [resolvable:$false] %s927_s12 }
  0x4b   : > { %s929_s30 = scalar_lea.vmem %s928_s12, 256  ;;  %p930_p9 = scmp.lt.s32.totalorder %s1226_s10, %s928_s12 }
  0x4c   : > { %p925_p1 = pnand %p923_p0, %p1187_p3  ;;  %p931_p5 = scmp.lt.s32.totalorder %s929_s30, %s922_s1 }
  0x4e   : > { %p926_p8 = pneg %p925_p1  ;;  %p932_p10 = por %p931_p5, %p930_p9 }
  0x50   : > { %p933_p12 = pnand %p932_p10, %p926_p8 }
  0x52   : > { %936 = shalt.err (!%p933_p12)
}
  0x53   : > { %804 = dma.hbm_to_vmem [thread:$0]  (!%p1165_p13), %s1223_s9, 128, %s1226_s10, %s225_s23  }
  0x54   : > { %s266_s19 = scalar_lea.vmem [#allocation10], %s1158_s6  ;;  %s937_s14 = scalar_lea.hbm %s1232_s5, 128 }
  0x55   : > { %s274_s29 = sshll.u32 %s266_s19, 4  ;;  %p938_p11 = scmp.ne.s32.totalorder %s1232_s5, %s937_s14  ;;  %s275_s29 = int_to_ptr.vmem [resolvable:$true] %s274_s29 }
  0x56   : > { %s942_s26 = scalar_lea.hbm %s1370_s2, 512  ;;  %p943_p4 = scmp.lt.u32.totalorder %s1232_s5, %s1370_s2 }
  0x57   : > { %p940_p5 = pnand %p938_p11, %p1187_p3  ;;  %p944_p6 = scmp.lt.u32.totalorder %s942_s26, %s937_s14 }
  0x58   : > { %p946_p0 = scmp.lt.u32.totalorder %s937_s14, %s1232_s5 }
  0x59   : > { %p941_p2 = pneg %p940_p5  ;;  %p945_p7 = por %p944_p6, %p943_p4 }
  0x5b   : > { %p947_p1 = por %p946_p0, %p945_p7 }
  0x5d   : > { %p948_p8 = pnand %p947_p1, %p941_p2 }
  0x5f   : > { %951 = shalt.err (!%p948_p8)
}
  0x60   : > { %s952_s23 = scalar_lea.vmem %s275_s29, 128  ;;  %s1057_s6 = smov [#allocation10]  }
  0x61   : > { %p953_p9 = scmp.ne.s32.totalorder %s275_s29, %s952_s23  ;;  %s957_s9 = sshll.u32 %s1057_s6, 4  ;;  %s958_s9 = int_to_ptr.vmem [resolvable:$false] %s957_s9 }
  0x62   : > { %s959_s10 = scalar_lea.vmem %s958_s9, 256  ;;  %p960_p11 = scmp.lt.s32.totalorder %s275_s29, %s958_s9 }
  0x63   : > { %p955_p10 = pnand %p953_p9, %p1187_p3  ;;  %p961_p5 = scmp.lt.s32.totalorder %s959_s10, %s952_s23 }
  0x65   : > { %p956_p12 = pneg %p955_p10  ;;  %p962_p13 = por %p961_p5, %p960_p11 }
  0x67   : > { %p963_p4 = pnand %p962_p13, %p956_p12 }
  0x69   : > { %966 = shalt.err (!%p963_p4)
}
  0x6a   : > { %p1396_p6 = scmp.ne.s32.totalorder %s1389_s8, 0  ;;  %p1397_p2 = scmp.ne.s32.totalorder %s1394_s24, 0 }
  0x6b   : > { %s1279_s25 = sand.u32 (!%p1397_p2), 1, %s1037_s16   ;;  %p1398_p13 = scmp.ne.s32.totalorder (!%p1397_p2), %s1384_s27, 0 }
  0x6c   : > { %810 = dma.hbm_to_vmem [thread:$0]  (!%p1396_p6), %s1232_s5, 128, %s275_s29, %s1181_s22  }
  0x6d   : > { %316 = sbr.rel (%p1397_p2) target bundleno = 941 (0x3ad), region = 36  ;;  %s1282_s12 = sshll.u32 (!%p1397_p2), %s1279_s25, 3 }
  0x6e   : > { %s319_s30 = scalar_lea.sflag (!%p1397_p2), [#allocation6], %s1279_s25  ;;  %s322_s19 = scalar_lea.vmem (!%p1397_p2), [#allocation5], %s1282_s12 }
  0x74   : > { %1020 = dma.done.wait (%p1398_p13), %s319_s30, 128  }
  0x75   : > { %1022 = vsyncadd (%p1398_p13), %s319_s30, 4294967168  ;;  %s327_s8 = sand.u32 1, %s1119_s21   ;;  %s331_s24 = scalar_lea.vmem [#allocation8], %s1282_s12 }
  0x76   : > { %s328_s22 = scalar_lea.sflag [#allocation9], %s327_s8 }
  0x77   : > { %1024 = dma.done.wait (%p1398_p13), %s328_s22, 256  }
  0x78   : > { %1026 = vsyncadd (%p1398_p13), %s328_s22, 4294967040  ;;  %vm431_vm0 = vcmask 261120   ;;  %v1058_v0 = vmov 0.0   ;;  %vm1059_vm1 = vmmov 0   ;;  %v434_v1 = vld [vmem:[%s331_s24] sm:$0xff]  ;;  %v433_v2 = vld [vmem:[%s322_s19] sm:$0xff]  ;;  %v443_v8 = vlaneseq }
  0x79   : > { %781 = vmatprep.subr.bf16.mxu0 %v1058_v0  ;;  %432 = vst.msk [vmem:[#allocation4] sm:$0xff] %vm431_vm0, %v1058_v0  ;;  %783 = vmatprep.mubr.msk.bf16.mxu0 %vm1059_vm1, %v1058_v0  ;;  %v439_v3 = vpack.c.bf16 %v434_v1, %v434_v1  ;;  %v437_v5 = vmul.f32 0.17677669, %v433_v2  ;;  %vm428_vm2 = vcmask 7168   ;;  %v1060_v7 = vmov -inf   ;;  %s394_s21 = ssub.s32 0, %s1045_s18 }
  0x7a   : > { %787 = vmatprep.subr.bf16.mxu1 %v1058_v0  ;;  %789 = vmatprep.mubr.msk.bf16.mxu1 %vm1059_vm1, %v1058_v0  ;;  %429 = vst.msk [vmem:[#allocation2] sm:$0xff] %vm428_vm2, %v1060_v7  ;;  %430 = vst.msk [vmem:[#allocation3] sm:$0xff] %vm428_vm2, %v1058_v0  ;;  %s768_s27 = smin.u32 %s1045_s18, %s394_s21  ;;  %p393_p3 = scmp.lt.s32.totalorder %s1045_s18, 0  ;;  %v444_v10 = vshrl.u32 %v443_v8, 7  ;;  %vm496_vm4 = vcmask 64512   ;;  %v1061_v20 = vmov 0  }
  0x7b   : > { %v453_v4 = vsel %vm431_vm0, %v439_v3, 0  ;;  %v438_v6 = vpack.c.bf16 %v437_v5, %v437_v5  ;;  %s396_s5 = sand.u32 1, %s768_s27   ;;  %869 = vset.pattern.permute.xlu0 %v1061_v20  ;;  %870 = vset.pattern.permute.xlu1 %v1061_v20  ;;  %s340_s1 = scalar_lea.vmem [#allocation10], %s1282_s12  ;;  %vm533_vm5 = vcmask 1043456  }
  0x7c   : > { %782 = vmatpush3.bf16.xpose.msra.mxu0 %v453_v4  ;;  %s397_s29 = ssub.s32 0, %s396_s5  ;;  %v445_v11 = vsub.s32 0, %v444_v10  ;;  %v435_v25 = vld [vmem:[%s340_s1] sm:$0xff]  ;;  %s774_s7 = sshll.u32 %s1045_s18, 7 }
  0x7d   : > { %s1411_s29 = smov (!%p393_p3, %s397_s29), %s396_s5  ;;  %v529_v26 = vpack.c.bf16 %v435_v25, %v435_v25  ;;  %s392_s23 = scalar_lea.vmem [#allocation11], %s1282_s12 }
  0x7e   : > { %p770_p7 = scmp.lt.s32.totalorder %s1411_s29, 0  ;;  %s403_s14 = sadd.s32 2, %s1411_s29 }
  0x7f   : > { %v535_v27 = vsel %vm533_vm5, %v529_v26, 0  ;;  %s607_s6 = sshll.u32 %s392_s23, 4  ;;  %s1319_s30 = scalar_lea.hbm %s1372_s4, %s774_s7  ;;  %s1321_s6 = int_to_ptr.vmem [resolvable:$true] %s607_s6 }
  0x80   : > { %s1413_s14 = smov (!%p770_p7, %s403_s14), %s1411_s29  ;;  %788 = vmatpush3.bf16.msra.mxu1 %v535_v27  ;;  %v521_v42 = vld [vmem:[#allocation4] sm:$0xff]  ;;  %s593_s19 = scalar_lea.sflag [#allocation7], %s1279_s25 }
  0x81   : > { %p405_p0 = scmp.lt.s32.totalorder %s1413_s14, 1  ;;  %v495_v21 = vld [vmem:[#allocation2] sm:$0xff]  ;;  %v512_v36 = vld [vmem:[#allocation3] sm:$0xff]  ;;  %s967_s8 = scalar_lea.vmem %s1321_s6, 128 }
  0x82   : > { %p968_p1 = scmp.ne.s32.totalorder %s1321_s6, %s967_s8  ;;  %p1399_p8 = scmp.ne.s32.totalorder %s1385_s28, 0 }
  0x83   : > { %784 = vmatmul.mubr.msk.bf16.vlgmr.msra.gmra.mrb[0].mxu0 %vm431_vm0, %v438_v6  ;;  %s1415_s14 = smov (!%p405_p0, %s1413_s14), 1  ;;  %s1062_s18 = smov [#allocation11]  }
  0x84   : > { %s410_s26 = scalar_lea.vmem %s1371_s3, %s1415_s14  ;;  %p969_p9 = pnand %p968_p1, %p1399_p8 }
  0x85   : > { %v436_v9 = vld [vmem:[%s410_s26] sm:$0x1]  ;;  %s971_s12 = sshll.u32 %s1062_s18, 4  ;;  %s972_s12 = int_to_ptr.vmem [resolvable:$false] %s971_s12 }
  0x86   : > { %vm440_vm3 = vcmp.eq.f32.partialorder %v436_v9, 0.0  ;;  %p970_p10 = pneg %p969_p9  ;;  %s973_s22 = scalar_lea.vmem %s972_s12, 256 }
  0x87   : > { %v441_v12 = vsel %vm440_vm3, -1e+10, %v1058_v0  ;;  %p974_p12 = scmp.lt.s32.totalorder %s1321_s6, %s972_s12  ;;  %p975_p11 = scmp.lt.s32.totalorder %s973_s22, %s967_s8 }
  0x88   : > { %v446_v13 = vrot.slane %v441_v12, %v445_v11 }
  0x89   : > { %p976_p5 = por %p975_p11, %p974_p12 }
  0x8b   : > { %p977_p4 = pnand %p976_p5, %p970_p10 }
 0x156   : > { %v489_v14 = vpop.f32.mrb[0].mxu0 }
 0x157   : > { %v490_v15 = vadd.f32 %v489_v14, %v446_v13  ;;  %v785_v16 = vpop.f32.mrb[1].mxu0 }
 0x158   : > { %v492_v17 = vpop.f32.mrb[2].mxu0 }
 0x159   : > { %v786_v18 = vpop.f32.mrb[3].mxu0  ;;  %v497_v19 = vsel %vm496_vm4, %v490_v15, -inf }
 0x15a   : > { %498 = vmax.xlane.f32.xlu0 %v497_v19 }
 0x1e7   : > { %v499_v22 = vpop.xlane.xlu0 %498 }
 0x1e8   : > { %v500_v23 = vmax.f32 %v495_v21, %v499_v22 }
 0x1ea   : > { %v501_v24 = vsub.f32 %v495_v21, %v500_v23  ;;  %520 = vst.msk [vmem:[#allocation2] sm:$0xff] %vm428_vm2, %v500_v23  ;;  %506 = vperm.xlu0 %869, %v500_v23  }
 0x1ec   : > { %v502_v34 = vmul.f32 1.442695, %v501_v24 }
 0x269   : > { %v507_v28 = vpop.permute.xlu0 %506 }
 0x26a   : > { %v509_v29 = vsub.f32 %v490_v15, %v507_v28 }
 0x26c   : > { %v510_v30 = vmul.f32 1.442695, %v509_v29 }
 0x26e   : > { %871 = vpow2.f32 %v510_v30 }
 0x26f   : > { %873 = vpow2.f32 %v502_v34 }
 0x278   : > { %v872_v31 = vpop.eup %871 }
 0x279   : > { %v514_v32 = vsel %vm496_vm4, %v872_v31, 0.0  ;;  %v528_v33 = vpack.c.bf16 %v872_v31, %v872_v31  ;;  %v874_v35 = vpop.eup %873 }
 0x27a   : > { %515 = vadd.xlane.f32.xlu1 %v514_v32  ;;  %v513_v37 = vmul.f32 %v874_v35, %v512_v36 }
 0x27b   : > { %790 = vmatmul.mubr.msk.bf16.vlgmr.msra.gmra.mrb[0].mxu1 %vm496_vm4, %v528_v33 }
 0x28b   : > { %524 = vperm.xlu1 %870, %v874_v35  }
 0x307   : > { %v516_v38 = vpop.xlane.xlu1 %515 }
 0x308   : > { %v517_v39 = vadd.f32 %v516_v38, %v513_v37 }
 0x30a   : > { %519 = vst.msk [vmem:[#allocation3] sm:$0xff] %vm428_vm2, %v517_v39 }
 0x30b   : > { %v525_v43 = vpop.permute.xlu1 %524 }
 0x30c   : > { %v527_v44 = vmul.f32 %v525_v43, %v521_v42 }
 0x311   : > { %v583_v40 = vld [vmem:[#allocation3] sm:$0xff] }
 0x312   : > { %875 = vrcp.f32 %v583_v40 }
 0x31c   : > { %v876_v41 = vpop.eup %875 }
 0x31d   : > { %587 = vperm.xlu1 %870, %v876_v41  }
 0x34e   : > { %v571_v45 = vpop.f32.mrb[0].mxu1 }
 0x34f   : > { %v577_v46 = vadd.f32 %v571_v45, %v527_v44  ;;  %v791_v47 = vpop.f32.mrb[1].mxu1 }
 0x350   : > { %v574_v48 = vpop.f32.mrb[2].mxu1 }
 0x351   : > { %578 = vst.msk [vmem:[#allocation4] sm:$0xff] %vm431_vm0, %v577_v46  ;;  %v792_v49 = vpop.f32.mrb[3].mxu1 }
 0x358   : > { %v582_v50 = vld [vmem:[#allocation4] sm:$0xff] }
 0x39c   : > { %v588_v51 = vpop.permute.xlu1 %587 }
 0x39d   : > { %v590_v52 = vmul.f32 %v588_v51, %v582_v50 }
 0x39f   : > { %591 = vst.msk [vmem:[%s392_s23] sm:$0xff] %vm431_vm0, %v590_v52 }
 0x3a0   : > { %980 = shalt.err (!%p977_p4)
}
 0x3a1   : > { %s981_s25 = scalar_lea.hbm %s1319_s30, 128  ;;  %s985_s27 = scalar_lea.hbm %s1372_s4, 512 }
 0x3a2   : > { %p982_p6 = scmp.ne.s32.totalorder %s1319_s30, %s981_s25  ;;  %p986_p3 = scmp.lt.u32.totalorder %s1319_s30, %s1372_s4 }
 0x3a3   : > { %p987_p7 = scmp.lt.u32.totalorder %s985_s27, %s981_s25  ;;  %p989_p1 = scmp.lt.u32.totalorder %s981_s25, %s1319_s30 }
 0x3a4   : > { %p983_p2 = pnand %p982_p6, %p1399_p8 }
 0x3a5   : > { %p988_p0 = por %p987_p7, %p986_p3 }
 0x3a6   : > { %p984_p13 = pneg %p983_p2 }
 0x3a7   : > { %p990_p9 = por %p989_p1, %p988_p0 }
 0x3a9   : > { %p991_p10 = pnand %p990_p9, %p984_p13 }
 0x3ab   : > { %994 = shalt.err (!%p991_p10)
}
 0x3ac   : > { %799 = dma.vmem_to_hbm [thread:$0]  (%p1399_p8), %s1321_s6, 128, %s1319_s30, %s593_s19  }
 0x3ad PF: > { %s1400_s14 = sld [smem:[#allocation18_spill]]  ;;  %p816_p12 = scmp.ge.s32.totalorder %s1053_s20, 2 }
 0x3ae   : > { %s619_s11 = sand.u32 1, %s1033_s15  }
 0x3af   : > { %s620_s13 = scalar_lea.sflag [#allocation7], %s619_s11 }
 0x3b3   : > { %p1401_p11 = scmp.ne.s32.totalorder %s1400_s14, 0 }
 0x3b5   : > { %p812_p5 = pnand %p816_p12, %p1401_p11 }
 0x3b7   : > { %1028 = dma.done.wait (!%p812_p5), %s620_s13, 128  }
 0x3b8   : > { %1030 = vsyncadd (!%p812_p5), %s620_s13, 4294967168  ;;  %s23_s20 = sadd.s32 1, %s1053_s20   ;;  %s1402_s28 = sld [smem:[#allocation17_spill]] }
 0x3b9   : > { %p20_p4 = scmp.ge.s32.totalorder %s23_s20, 6   ;;  %s1403_s18 = sld [smem:[#allocation15_spill]] }
 0x3ba   : > { %s1404_s19 = sld [smem:[#allocation16_spill]]  ;;  %s1405_s15 = smov %s1037_s16 }
 0x3bb   : > { %s1406_s16 = smov %s1041_s17  ;;  %22 = sbr.rel (!%p20_p4) target bundleno = 10 (0xa), region = 116 }
 0x3be   : > { %s1407_s17 = smov %s1402_s28 }
 0x3c2   :  { %625 = vsyncpa [#allocation6], 1 }
 0x3c3   :  { %627 = vsyncpa [#allocation6 + $0x1], 1 }
 0x3c4   :  { %628 = vsyncpa [#allocation9], 1 }
 0x3c5   :  { %630 = vsyncpa [#allocation9 + $0x1], 1 }
 0x3c6   :  { %631 = vsyncpa [#allocation7], 1 }
 0x3c7   :  { %633 = vsyncpa [#allocation7 + $0x1], 1 }

</bundles_post_ra>
